<compile_context>
chip_gen: v6e
topology: v6e:2x2x1
jax: 0.10.0
libtpu: 0.0.40
codegen_flags: <defaults>
</compile_context>

<pallas_src>
import math

import jax
import jax.numpy as jnp
from jax.experimental import pallas as pl
from jax.experimental.pallas import tpu as pltpu


def _round_up(a, b):
    return (a + b - 1) // b * b


# --------------------------------------------------------------------- pass 1
def _matmul_stats_kernel(p_ref, w_ref, y_ref, s_ref, ss_ref):
    # Conv2d (bias=False) as an MXU matmul: bf16 x bf16 -> f32 accumulation.
    y = jnp.dot(p_ref[...], w_ref[...], preferred_element_type=jnp.float32)  # [TM, OCp]
    y_ref[...] = y
    # Single-pass per-tile partial BN statistics: Sum(y), Sum(y*y).
    s = jnp.sum(y, axis=0, keepdims=True)         # [1, OCp]
    ss = jnp.sum(y * y, axis=0, keepdims=True)    # [1, OCp]
    s_ref[...] = jnp.broadcast_to(s, s_ref.shape)     # (1, 8, OCp) output tile
    ss_ref[...] = jnp.broadcast_to(ss, ss_ref.shape)


# --------------------------------------------------------------------- pass 2
def _bn_gelu_kernel(y_ref, scale_ref, shift_ref, o_ref):
    # Pre-folded BN: z = y * scale + shift, with scale = gamma*rsqrt(var+eps),
    # shift = beta - mean*scale (mean/var are full-M batch stats).
    z = y_ref[...] * scale_ref[...] + shift_ref[...]
    # GELU(approximate='tanh')
    c = math.sqrt(2.0 / math.pi)
    g = 0.5 * z * (1.0 + jnp.tanh(c * (z + 0.044715 * z * z * z)))
    o_ref[...] = g.astype(o_ref.dtype)


# -------------------------------------------------------------- tile sizing --
def _pass1_vmem_bytes(tm, kp, ocp):
    return (2 * tm * kp * 2        # patches tile, bf16, double-buffered
            + 2 * kp * ocp * 2     # weight, bf16 (resident; budget 2 buffers)
            + 2 * tm * ocp * 4     # y tile, f32, double-buffered
            + 4 * 8 * ocp * 4)     # partial-sum output tiles


def _pass2_vmem_bytes(tm, ocp):
    return (2 * tm * ocp * 4       # y tile in, double-buffered
            + 2 * tm * ocp * 4     # out tile, double-buffered
            + 4 * ocp * 4)         # scale / shift


def _pick_tm(m, kp, ocp, budget_bytes=24 << 20):
    # Conservative budget that fits every generation (binding constraint is
    # v7x's 64 MiB physical VMEM; leave plenty of headroom).
    tm = min(1024, _round_up(max(m, 8), 8))
    while tm > 8 and max(_pass1_vmem_bytes(tm, kp, ocp),
                         _pass2_vmem_bytes(tm, ocp)) > budget_bytes:
        tm = max(8, _round_up(tm // 2, 8))
    return tm


# ------------------------------------------------------------------ wrapper --
def conv_bn_act(x_nchw, weight, gamma, beta, *, stride=1, padding=0, eps=1e-5):
    """x_nchw: [N, C, H, W]; weight: [OC, C, KH, KW] (PyTorch conventions)."""
    N, C, H, W = x_nchw.shape
    OC, _, KH, KW = weight.shape

    if padding:
        x_nchw = jnp.pad(
            x_nchw, ((0, 0), (0, 0), (padding, padding), (padding, padding)))
        H += 2 * padding
        W += 2 * padding

    OH = (H - KH) // stride + 1
    OW = (W - KW) // stride + 1
    M = N * OH * OW
    K = C * KH * KW

    # Lane-dense padded sizes (128-wide vregs / MXU feeds; unmasked vst on output).
    K_pad = _round_up(K, 128)
    OC_pad = _round_up(OC, 128)

    # ---- im2col (plain-JAX glue; column order c-major then (kh, kw)) ----
    # TODO(synk): move im2col in-kernel (NHWC halo tile DMA + pl.ds taps) to avoid
    # the KH*KW HBM blow-up and the NCHW<->NHWC transpose passes.
    taps = []
    for i in range(KH):
        for j in range(KW):
            taps.append(
                x_nchw[:, :, i:i + stride * OH:stride, j:j + stride * OW:stride])
    p = jnp.stack(taps, axis=2).reshape(N, C * KH * KW, OH, OW)
    patches = p.transpose(0, 2, 3, 1).reshape(M, K)

    # ---- tile sizing / VMEM budget (generation-safe) ----
    TM = _pick_tm(M, K_pad, OC_pad)
    M_pad = _round_up(max(M, TM), TM)
    n_tiles = M_pad // TM
    needed = max(_pass1_vmem_bytes(TM, K_pad, OC_pad), _pass2_vmem_bytes(TM, OC_pad))
    vmem_limit = int(min(48 << 20, max(16 << 20, 3 * needed)))

    # ---- pad + cast MXU operands to bf16 (f32 accumulation in-kernel) ----
    # Padded rows/cols are zero, so they contribute nothing to y or the BN sums.
    patches_p = jnp.pad(patches, ((0, M_pad - M), (0, K_pad - K))).astype(jnp.bfloat16)
    w2d = weight.reshape(OC, K).T.astype(jnp.float32)                      # [K, OC]
    w_p = jnp.pad(w2d, ((0, K_pad - K), (0, OC_pad - OC))).astype(jnp.bfloat16)

    # ---- pass 1: conv matmul + per-tile partial BN sums ----
    y_pad, psum, psumsq = pl.pallas_call(
        _matmul_stats_kernel,
        out_shape=(
            jax.ShapeDtypeStruct((M_pad, OC_pad), jnp.float32),
            jax.ShapeDtypeStruct((n_tiles, 8, OC_pad), jnp.float32),
            jax.ShapeDtypeStruct((n_tiles, 8, OC_pad), jnp.float32),
        ),
        grid=(n_tiles,),
        in_specs=[
            pl.BlockSpec((TM, K_pad), lambda i: (i, 0)),
            pl.BlockSpec((K_pad, OC_pad), lambda i: (0, 0)),   # weight VMEM-resident
        ],
        out_specs=(
            pl.BlockSpec((TM, OC_pad), lambda i: (i, 0)),
            pl.BlockSpec((1, 8, OC_pad), lambda i: (i, 0, 0)),
            pl.BlockSpec((1, 8, OC_pad), lambda i: (i, 0, 0)),
        ),
        compiler_params=pltpu.CompilerParams(
            dimension_semantics=("parallel",),
            vmem_limit_bytes=vmem_limit,
        ),
    )(patches_p, w_p)

    # ---- finalize BatchNorm batch statistics over the FULL M (tiny, plain JAX) ----
    m = jnp.float32(M)                       # true row count (padded rows are zero)
    sum_y = jnp.sum(psum[:, 0, :], axis=0)
    sum_yy = jnp.sum(psumsq[:, 0, :], axis=0)
    mean = sum_y / m
    var = jnp.maximum(sum_yy / m - mean * mean, 0.0)   # biased var (train-mode BN)
    gamma_p = jnp.pad(gamma.astype(jnp.float32), (0, OC_pad - OC), constant_values=1.0)
    beta_p = jnp.pad(beta.astype(jnp.float32), (0, OC_pad - OC))
    scale = gamma_p * jax.lax.rsqrt(var + eps)
    shift = beta_p - mean * scale
    scale2 = scale.reshape(1, OC_pad)
    shift2 = shift.reshape(1, OC_pad)
    # TODO(synk): running_mean/running_var (momentum=0.1) buffers are not updated;
    # forward output only needs batch statistics.

    # ---- pass 2: normalize + affine + GELU(tanh) ----
    out_pad = pl.pallas_call(
        _bn_gelu_kernel,
        out_shape=jax.ShapeDtypeStruct((M_pad, OC_pad), jnp.float32),
        grid=(n_tiles,),
        in_specs=[
            pl.BlockSpec((TM, OC_pad), lambda i: (i, 0)),
            pl.BlockSpec((1, OC_pad), lambda i: (0, 0)),
            pl.BlockSpec((1, OC_pad), lambda i: (0, 0)),
        ],
        out_specs=pl.BlockSpec((TM, OC_pad), lambda i: (i, 0)),
        compiler_params=pltpu.CompilerParams(
            dimension_semantics=("parallel",),
            vmem_limit_bytes=vmem_limit,
        ),
    )(y_pad, scale2, shift2)

    # ---- drop padding, back to NCHW ----
    out2d = out_pad[:M, :OC]
    return out2d.reshape(N, OH, OW, OC).transpose(0, 3, 1, 2)


if __name__ == "__main__":
    # Small deterministic example: ConvBnAct(in_channels=4, out_channels=8,
    # kernel_size=3, stride=1, padding=0, activation='gelu')
    key = jax.random.PRNGKey(0)
    k_x, k_w = jax.random.split(key)

    N, C, H, W = 2, 4, 16, 16
    OC, KH, KW = 8, 3, 3

    x = jax.random.normal(k_x, (N, C, H, W), dtype=jnp.float32)
    fan_in = C * KH * KW
    weight = jax.random.normal(k_w, (OC, C, KH, KW), dtype=jnp.float32) / math.sqrt(fan_in)
    gamma = jnp.ones((OC,), dtype=jnp.float32)   # BatchNorm2d default affine weight
    beta = jnp.zeros((OC,), dtype=jnp.float32)   # BatchNorm2d default affine bias

    out = conv_bn_act(x, weight, gamma, beta, stride=1, padding=0)
    out = jax.block_until_ready(out)
    assert out.shape == (N, OC, H - KH + 1, W - KW + 1)
    assert bool(jnp.all(jnp.isfinite(out)))
    print("KERNEL_OK")
</pallas_src>

<mosaic_0001>
module attributes {stable_mosaic.version = 11 : i64} {
  func.func @_matmul_stats_kernel(%arg0: i32, %arg1: memref<392x128xbf16, #tpu.memory_space<vmem>>, %arg2: memref<128x128xbf16, #tpu.memory_space<vmem>>, %arg3: memref<392x128xf32, #tpu.memory_space<vmem>>, %arg4: memref<1x8x128xf32, #tpu.memory_space<vmem>>, %arg5: memref<1x8x128xf32, #tpu.memory_space<vmem>>) attributes {dimension_semantics = [#tpu.dimension_semantics<parallel>], iteration_bounds = array<i64: 1>, scalar_prefetch = 0 : i64, scratch_operands = 0 : i64, tpu.core_type = #tpu.core_type<tc>, window_params = [{transform_indices = @transform_0, window_bounds = array<i64: 392, 128>}, {pipeline_mode = #tpu.pipeline_mode<synchronous>, transform_indices = @transform_1, window_bounds = array<i64: 128, 128>}, {transform_indices = @transform_2, window_bounds = array<i64: 392, 128>}, {transform_indices = @transform_3, window_bounds = array<i64: 1, 8, 128>}, {transform_indices = @transform_4, window_bounds = array<i64: 1, 8, 128>}]} {
    %c0 = arith.constant 0 : index
    %c0_0 = arith.constant 0 : index
    %0 = vector.load %arg1[%c0, %c0_0] : memref<392x128xbf16, #tpu.memory_space<vmem>>, vector<392x128xbf16>
    %c0_1 = arith.constant 0 : index
    %c0_2 = arith.constant 0 : index
    %1 = vector.load %arg2[%c0_1, %c0_2] : memref<128x128xbf16, #tpu.memory_space<vmem>>, vector<128x128xbf16>
    %cst = arith.constant dense<0.000000e+00> : vector<392x128xf32>
    %2 = tpu.matmul %0, %1, %cst {dimension_numbers = #tpu.dot_dimension_numbers<[1], [0], [0], [1], [0, 0, 1, 1], [], []>} : vector<392x128xbf16>, vector<128x128xbf16>, vector<392x128xf32> -> vector<392x128xf32>
    %c0_3 = arith.constant 0 : index
    %c0_4 = arith.constant 0 : index
    %3 = vector.load %arg3[%c0_3, %c0_4] : memref<392x128xf32, #tpu.memory_space<vmem>>, vector<392x128xf32>
    tpu.vector_store %arg3[%c0_3, %c0_4], %2 {strides = array<i32>} : memref<392x128xf32, #tpu.memory_space<vmem>>, vector<392x128xf32>,
    %cst_5 = arith.constant dense<0.000000e+00> : vector<128xf32>
    %4 = vector.multi_reduction <add>, %2, %cst_5 [0] : vector<392x128xf32> to vector<128xf32>
    %5 = vector.shape_cast %4 : vector<128xf32> to vector<1x128xf32>
    %6 = arith.mulf %2, %2 : vector<392x128xf32>
    %cst_6 = arith.constant dense<0.000000e+00> : vector<128xf32>
    %7 = vector.multi_reduction <add>, %6, %cst_6 [0] : vector<392x128xf32> to vector<128xf32>
    %8 = vector.shape_cast %7 : vector<128xf32> to vector<1x128xf32>
    %9 = vector.shape_cast %5 : vector<1x128xf32> to vector<1x1x128xf32>
    %10 = vector.broadcast %9 : vector<1x1x128xf32> to vector<1x8x128xf32>
    %c0_7 = arith.constant 0 : index
    %c0_8 = arith.constant 0 : index
    %c0_9 = arith.constant 0 : index
    %11 = vector.load %arg4[%c0_7, %c0_8, %c0_9] : memref<1x8x128xf32, #tpu.memory_space<vmem>>, vector<1x8x128xf32>
    tpu.vector_store %arg4[%c0_7, %c0_8, %c0_9], %10 {strides = array<i32>} : memref<1x8x128xf32, #tpu.memory_space<vmem>>, vector<1x8x128xf32>,
    %12 = vector.shape_cast %8 : vector<1x128xf32> to vector<1x1x128xf32>
    %13 = vector.broadcast %12 : vector<1x1x128xf32> to vector<1x8x128xf32>
    %c0_10 = arith.constant 0 : index
    %c0_11 = arith.constant 0 : index
    %c0_12 = arith.constant 0 : index
    %14 = vector.load %arg5[%c0_10, %c0_11, %c0_12] : memref<1x8x128xf32, #tpu.memory_space<vmem>>, vector<1x8x128xf32>
    tpu.vector_store %arg5[%c0_10, %c0_11, %c0_12], %13 {strides = array<i32>} : memref<1x8x128xf32, #tpu.memory_space<vmem>>, vector<1x8x128xf32>,
    return
  }
  func.func @transform_0(%arg0: i32) -> (i32, i32) {
    %c0_i32 = arith.constant 0 : i32
    %c0_i32_0 = arith.constant 0 : i32
    return %arg0, %c0_i32 : i32, i32
  }
  func.func @transform_1(%arg0: i32) -> (i32, i32) {
    %c0_i32 = arith.constant 0 : i32
    %c0_i32_0 = arith.constant 0 : i32
    %c0_i32_1 = arith.constant 0 : i32
    return %c0_i32, %c0_i32_0 : i32, i32
  }
  func.func @transform_2(%arg0: i32) -> (i32, i32) {
    %c0_i32 = arith.constant 0 : i32
    %c0_i32_0 = arith.constant 0 : i32
    return %arg0, %c0_i32 : i32, i32
  }
  func.func @transform_3(%arg0: i32) -> (i32, i32, i32) {
    %c0_i32 = arith.constant 0 : i32
    %c0_i32_0 = arith.constant 0 : i32
    %c0_i32_1 = arith.constant 0 : i32
    return %arg0, %c0_i32, %c0_i32_0 : i32, i32, i32
  }
  func.func @transform_4(%arg0: i32) -> (i32, i32, i32) {
    %c0_i32 = arith.constant 0 : i32
    %c0_i32_0 = arith.constant 0 : i32
    %c0_i32_1 = arith.constant 0 : i32
    return %arg0, %c0_i32, %c0_i32_0 : i32, i32, i32
  }
}

</mosaic_0001>

<bundles_post_ra>
// kernel: tpu_custom_call.1
= control target key start
LH: loop header
LB: loop body
LE: loop exit
PB: predicated region body
PF: predicated region fallthrough
CT: control target
= control target key end

     0   :  { %10 = vsyncpa [#allocation3], 0  ;;  %s1492_s0 = inlined_call_operand.hbm [shape: bf16[392,128], index: 0, kind: input, shape index: {}]   ;;  %s1493_s1 = inlined_call_operand.hbm [shape: bf16[128,128], index: 1, kind: input, shape index: {}]   ;;  %s1494_s2 = inlined_call_operand.hbm [shape: f32[392,128], index: 2, kind: output, shape index: {0}]   ;;  %s1495_s3 = inlined_call_operand.hbm [shape: f32[1,8,128], index: 3, kind: output, shape index: {1}]   ;;  %s1496_s4 = inlined_call_operand.hbm [shape: f32[1,8,128], index: 4, kind: output, shape index: {2}]  }
   0x1   :  { %11 = vsyncpa [#allocation6], 0 }
   0x2   :  { %12 = vsyncpa [#allocation4], 0 }
   0x3   :  { %13 = vsyncpa [#allocation9], 0  ;;  %s1141_s15 = smov [#allocation2]  }
   0x4   :  { %s19_s16 = sshll.u32 %s1141_s15, 4  ;;  %s20_s16 = int_to_ptr.vmem [resolvable:$true] %s19_s16 }
   0x5   :  { %s1041_s17 = scalar_lea.vmem %s20_s16, 3136  ;;  %p1046_p1 = scmp.lt.s32.totalorder %s20_s16, %s20_s16 }
   0x6   :  { %p1042_p0 = scmp.ne.s32.totalorder %s20_s16, %s1041_s17  ;;  %p1047_p2 = scmp.lt.s32.totalorder %s1041_s17, %s1041_s17 }
   0x8   :  { %p1048_p3 = por %p1047_p2, %p1046_p1 }
   0xa   :  { %p1049_p4 = pnand %p1048_p3, %p1042_p0 }
   0xc   :  { %1052 = shalt.err (!%p1049_p4)
}
   0xd   :  { %s1142_s18 = smov 64   ;;  %s1143_s19 = smov 4  }
   0xe   :  { %25 = dma.hbm_to_vmem [thread:$0]  %s1492_s0, 3136, %s20_s16, [#allocation3], %s1142_s18, %s1142_s18, %s1143_s19  }
   0xf   :  { %s1144_s22 = smov [#allocation5]  }
  0x10   :  { %s31_s23 = sshll.u32 %s1144_s22, 4  ;;  %s32_s23 = int_to_ptr.vmem [resolvable:$true] %s31_s23 }
  0x11   :  { %s1061_s24 = scalar_lea.vmem %s32_s23, 1024  ;;  %p1066_p6 = scmp.lt.s32.totalorder %s32_s23, %s32_s23 }
  0x12   :  { %p1062_p5 = scmp.ne.s32.totalorder %s32_s23, %s1061_s24  ;;  %p1067_p7 = scmp.lt.s32.totalorder %s1061_s24, %s1061_s24 }
  0x14   :  { %p1068_p8 = por %p1067_p7, %p1066_p6 }
  0x16   :  { %p1069_p9 = pnand %p1068_p8, %p1062_p5 }
  0x18   :  { %1072 = shalt.err (!%p1069_p9)
}
  0x19   :  { %37 = dma.hbm_to_vmem [thread:$0]  %s1493_s1, 1024, %s32_s23, [#allocation6], %s1142_s18, %s1142_s18, %s1143_s19  }
  0x1a   :  { %1133 = dma.done.wait [#allocation3], 3136  }
  0x1b   :  { %1134 = vsyncadd [#allocation3], 4294964160 }
  0x1c   :  { %1135 = dma.done.wait [#allocation6], 1024  }
  0x1d   :  { %1136 = vsyncadd [#allocation6], 4294966272  ;;  %v1145_v0 = vmov 0.0   ;;  %vm1146_vm0 = vmmov 0   ;;  %v1000_v1 = vld [vmem:[#allocation5 + $0x38] sm:$0xff]   ;;  %v1001_v2 = vld [vmem:[#allocation5 + $0x30] sm:$0xff]  }
  0x1e   :  { %857 = vmatprep.subr.bf16.mxu0 %v1145_v0  ;;  %873 = vmatprep.mubr.msk.bf16.mxu0 %vm1146_vm0, %v1145_v0  ;;  %v1002_v3 = vld [vmem:[#allocation5 + $0x28] sm:$0xff]   ;;  %v1003_v4 = vld [vmem:[#allocation5 + $0x20] sm:$0xff]   ;;  %v1004_v5 = vld [vmem:[#allocation5 + $0x18] sm:$0xff]   ;;  %s1147_s0 = smov [#allocation7]  }
  0x1f   :  { %973 = vmatprep.subr.bf16.mxu1 %v1145_v0  ;;  %925 = vmatprep.mubr.msk.bf16.mxu1 %vm1146_vm0, %v1145_v0  ;;  %v1005_v6 = vld [vmem:[#allocation5 + $0x10] sm:$0xff]   ;;  %v1006_v7 = vld [vmem:[#allocation5 + $0x8] sm:$0xff]   ;;  %v1007_v8 = vld [vmem:[#allocation5] sm:$0xff]   ;;  %s751_s1 = sshll.u32 %s1147_s0, 4  ;;  %s752_s1 = int_to_ptr.vmem [resolvable:$true] %s751_s1 }
  0x20   :  { %858 = vmatpush3.bf16.msra.mxu0 %v1000_v1  ;;  %981 = vmatpush3.bf16.msra.mxu1 %v1000_v1  ;;  %v1008_v9 = vld [vmem:[#allocation2] sm:$0xff]   ;;  %v1015_v10 = vld [vmem:[#allocation2 + $0x68] sm:$0xff]   ;;  %v1017_v12 = vld [vmem:[#allocation2 + $0x70] sm:$0xff]   ;;  %s1073_s27 = scalar_lea.vmem %s752_s1, 6272  ;;  %p1078_p11 = scmp.lt.s32.totalorder %s752_s1, %s752_s1 }
  0x21   :  { %859 = vmatprep.subr.bf16.mxu0 %v1145_v0  ;;  %974 = vmatprep.subr.bf16.mxu1 %v1145_v0  ;;  %v1009_v11 = vld [vmem:[#allocation2 + $0x8] sm:$0xff]   ;;  %v1010_v13 = vld [vmem:[#allocation2 + $0x10] sm:$0xff]   ;;  %v1019_v14 = vld [vmem:[#allocation2 + $0x78] sm:$0xff]   ;;  %p1074_p10 = scmp.ne.s32.totalorder %s752_s1, %s1073_s27  ;;  %p1079_p12 = scmp.lt.s32.totalorder %s1073_s27, %s1073_s27 }
  0x22   :  { %v1011_v15 = vld [vmem:[#allocation2 + $0x18] sm:$0xff]   ;;  %v1021_v16 = vld [vmem:[#allocation2 + $0x80] sm:$0xff]   ;;  %v1023_v18 = vld [vmem:[#allocation2 + $0x88] sm:$0xff]  }
  0x23   :  { %v1012_v17 = vld [vmem:[#allocation2 + $0x20] sm:$0xff]   ;;  %v1013_v19 = vld [vmem:[#allocation2 + $0x28] sm:$0xff]   ;;  %v1025_v20 = vld [vmem:[#allocation2 + $0x90] sm:$0xff]   ;;  %p1080_p13 = por %p1079_p12, %p1078_p11 }
  0x24   :  { %860 = vmatpush3.bf16.msra.mxu0 %v1001_v2  ;;  %982 = vmatpush3.bf16.msra.mxu1 %v1001_v2  ;;  %v1014_v21 = vld [vmem:[#allocation2 + $0x30] sm:$0xff]   ;;  %v1027_v22 = vld [vmem:[#allocation2 + $0x98] sm:$0xff]   ;;  %v1028_v24 = vld [vmem:[#allocation2 + $0xa0] sm:$0xff]  }
  0x25   :  { %861 = vmatprep.subr.bf16.mxu0 %v1145_v0  ;;  %975 = vmatprep.subr.bf16.mxu1 %v1145_v0  ;;  %v1016_v23 = vld [vmem:[#allocation2 + $0x38] sm:$0xff]   ;;  %v1018_v25 = vld [vmem:[#allocation2 + $0x40] sm:$0xff]   ;;  %v1029_v26 = vld [vmem:[#allocation2 + $0xa8] sm:$0xff]   ;;  %p1081_p0 = pnand %p1080_p13, %p1074_p10 }
  0x26   :  { %v1020_v27 = vld [vmem:[#allocation2 + $0x48] sm:$0xff]   ;;  %v1030_v28 = vld [vmem:[#allocation2 + $0xb0] sm:$0xff]   ;;  %v1031_v30 = vld [vmem:[#allocation2 + $0xb8] sm:$0xff]  }
  0x27   :  { %v1022_v29 = vld [vmem:[#allocation2 + $0x50] sm:$0xff]   ;;  %v1024_v31 = vld [vmem:[#allocation2 + $0x58] sm:$0xff]   ;;  %v1032_v32 = vld [vmem:[#allocation2 + $0xc0] ss:$0 sps:$4 sm:$0xff]  }
  0x28   :  { %862 = vmatpush3.bf16.msra.mxu0 %v1002_v3  ;;  %983 = vmatpush3.bf16.msra.mxu1 %v1002_v3  ;;  %v1026_v33 = vld [vmem:[#allocation2 + $0x60] sm:$0xff]  }
  0x29   :  { %863 = vmatprep.subr.bf16.mxu0 %v1145_v0  ;;  %976 = vmatprep.subr.bf16.mxu1 %v1145_v0 }
  0x2c   :  { %864 = vmatpush3.bf16.msra.mxu0 %v1003_v4  ;;  %984 = vmatpush3.bf16.msra.mxu1 %v1003_v4 }
  0x2d   :  { %865 = vmatprep.subr.bf16.mxu0 %v1145_v0  ;;  %977 = vmatprep.subr.bf16.mxu1 %v1145_v0 }
  0x30   :  { %866 = vmatpush3.bf16.msra.mxu0 %v1004_v5  ;;  %985 = vmatpush3.bf16.msra.mxu1 %v1004_v5 }
  0x31   :  { %867 = vmatprep.subr.bf16.mxu0 %v1145_v0  ;;  %978 = vmatprep.subr.bf16.mxu1 %v1145_v0 }
  0x34   :  { %868 = vmatpush3.bf16.msra.mxu0 %v1005_v6  ;;  %986 = vmatpush3.bf16.msra.mxu1 %v1005_v6 }
  0x35   :  { %869 = vmatprep.subr.bf16.mxu0 %v1145_v0  ;;  %979 = vmatprep.subr.bf16.mxu1 %v1145_v0 }
  0x38   :  { %870 = vmatpush3.bf16.msra.mxu0 %v1006_v7  ;;  %987 = vmatpush3.bf16.msra.mxu1 %v1006_v7 }
  0x39   :  { %871 = vmatprep.subr.bf16.mxu0 %v1145_v0  ;;  %980 = vmatprep.subr.bf16.mxu1 %v1145_v0 }
  0x3c   :  { %872 = vmatpush3.bf16.msra.mxu0 %v1007_v8  ;;  %988 = vmatpush3.bf16.msra.mxu1 %v1007_v8 }
  0x3f   :  { %874 = vmatmul.mubr.bf16.vlgmr.msra.gmra.mxu0 %v1008_v9  ;;  %926 = vmatmul.mubr.bf16.vlgmr.msra.gmra.mxu1 %v1015_v10 }
  0x40   :  { %877 = vmatprep.mubr.msk.bf16.mxu0 %vm1146_vm0, %v1145_v0  ;;  %929 = vmatprep.mubr.msk.bf16.mxu1 %vm1146_vm0, %v1145_v0 }
  0x47   :  { %878 = vmatmul.mubr.bf16.gmra.mxu0 %v1009_v11  ;;  %930 = vmatmul.mubr.bf16.gmra.mxu1 %v1017_v12 }
  0x48   :  { %881 = vmatprep.mubr.msk.bf16.mxu0 %vm1146_vm0, %v1145_v0  ;;  %933 = vmatprep.mubr.msk.bf16.mxu1 %vm1146_vm0, %v1145_v0 }
  0x4f   :  { %882 = vmatmul.mubr.bf16.gmra.mxu0 %v1010_v13  ;;  %934 = vmatmul.mubr.bf16.gmra.mxu1 %v1019_v14 }
  0x50   :  { %885 = vmatprep.mubr.msk.bf16.mxu0 %vm1146_vm0, %v1145_v0  ;;  %937 = vmatprep.mubr.msk.bf16.mxu1 %vm1146_vm0, %v1145_v0 }
  0x57   :  { %886 = vmatmul.mubr.bf16.gmra.mxu0 %v1011_v15  ;;  %938 = vmatmul.mubr.bf16.gmra.mxu1 %v1021_v16 }
  0x58   :  { %889 = vmatprep.mubr.msk.bf16.mxu0 %vm1146_vm0, %v1145_v0  ;;  %941 = vmatprep.mubr.msk.bf16.mxu1 %vm1146_vm0, %v1145_v0 }
  0x5f   :  { %890 = vmatmul.mubr.bf16.gmra.mxu0 %v1012_v17  ;;  %942 = vmatmul.mubr.bf16.gmra.mxu1 %v1023_v18 }
  0x60   :  { %893 = vmatprep.mubr.msk.bf16.mxu0 %vm1146_vm0, %v1145_v0  ;;  %945 = vmatprep.mubr.msk.bf16.mxu1 %vm1146_vm0, %v1145_v0 }
  0x67   :  { %894 = vmatmul.mubr.bf16.gmra.mxu0 %v1013_v19  ;;  %946 = vmatmul.mubr.bf16.gmra.mxu1 %v1025_v20 }
  0x68   :  { %897 = vmatprep.mubr.msk.bf16.mxu0 %vm1146_vm0, %v1145_v0  ;;  %949 = vmatprep.mubr.msk.bf16.mxu1 %vm1146_vm0, %v1145_v0 }
  0x6f   :  { %898 = vmatmul.mubr.bf16.gmra.mxu0 %v1014_v21  ;;  %950 = vmatmul.mubr.bf16.gmra.mxu1 %v1027_v22 }
  0x70   :  { %901 = vmatprep.mubr.msk.bf16.mxu0 %vm1146_vm0, %v1145_v0  ;;  %953 = vmatprep.mubr.msk.bf16.mxu1 %vm1146_vm0, %v1145_v0 }
  0x77   :  { %902 = vmatmul.mubr.bf16.gmra.mxu0 %v1016_v23  ;;  %954 = vmatmul.mubr.bf16.gmra.mxu1 %v1028_v24 }
  0x78   :  { %905 = vmatprep.mubr.msk.bf16.mxu0 %vm1146_vm0, %v1145_v0  ;;  %957 = vmatprep.mubr.msk.bf16.mxu1 %vm1146_vm0, %v1145_v0 }
  0x7f   :  { %906 = vmatmul.mubr.bf16.gmra.mxu0 %v1018_v25  ;;  %958 = vmatmul.mubr.bf16.gmra.mxu1 %v1029_v26 }
  0x80   :  { %909 = vmatprep.mubr.msk.bf16.mxu0 %vm1146_vm0, %v1145_v0  ;;  %961 = vmatprep.mubr.msk.bf16.mxu1 %vm1146_vm0, %v1145_v0 }
  0x87   :  { %910 = vmatmul.mubr.bf16.gmra.mxu0 %v1020_v27  ;;  %962 = vmatmul.mubr.bf16.gmra.mxu1 %v1030_v28 }
  0x88   :  { %913 = vmatprep.mubr.msk.bf16.mxu0 %vm1146_vm0, %v1145_v0  ;;  %965 = vmatprep.mubr.msk.bf16.mxu1 %vm1146_vm0, %v1145_v0 }
  0x8f   :  { %914 = vmatmul.mubr.bf16.gmra.mxu0 %v1022_v29  ;;  %966 = vmatmul.mubr.bf16.gmra.mxu1 %v1031_v30 }
  0x90   :  { %917 = vmatprep.mubr.msk.bf16.mxu0 %vm1146_vm0, %v1145_v0  ;;  %969 = vmatprep.mubr.msk.bf16.mxu1 %vm1146_vm0, %v1145_v0 }
  0x97   :  { %918 = vmatmul.mubr.bf16.gmra.mxu0 %v1024_v31  ;;  %970 = vmatmul.mubr.bf16.gmra.mxu1 %v1032_v32 }
  0x98   :  { %921 = vmatprep.mubr.msk.bf16.mxu0 %vm1146_vm0, %v1145_v0 }
  0x9f   :  { %922 = vmatmul.mubr.bf16.gmra.mxu0 %v1026_v33 }
  0xff   :  { %v1249_v34 = vpop.f32.mrf.mxu0  ;;  %v1251_v35 = vpop.f32.mrf.mxu1 }
 0x100   :  { %538 = vst [vmem:[#allocation7] sm:$0xff] %v1249_v34  ;;  %564 = vst [vmem:[#allocation7 + $0xd0] sm:$0xff] %v1251_v35  ;;  %v641_v25 = vmul.f32 %v1249_v34, %v1249_v34 }
 0x101   :  { %v875_v36 = vpop.f32.mrf.mxu0  ;;  %v927_v37 = vpop.f32.mrf.mxu1 }
 0x103   :  { %v1255_v38 = vpop.f32.mrf.mxu0  ;;  %v1257_v39 = vpop.f32.mrf.mxu1 }
 0x104   :  { %539 = vst [vmem:[#allocation7 + $0x8] sm:$0xff] %v1255_v38  ;;  %565 = vst [vmem:[#allocation7 + $0xd8] sm:$0xff] %v1257_v39  ;;  %v642_v22 = vmul.f32 %v1255_v38, %v1255_v38  ;;  %v587_v26 = vadd.f32 %v1255_v38, %v1249_v34 }
 0x105   :  { %v876_v40 = vpop.f32.mrf.mxu0  ;;  %v928_v41 = vpop.f32.mrf.mxu1 }
 0x106   :  { %v690_v30 = vadd.f32 %v642_v22, %v641_v25 }
 0x107   :  { %v1261_v42 = vpop.f32.mrf.mxu0  ;;  %v1263_v43 = vpop.f32.mrf.mxu1 }
 0x108   :  { %540 = vst [vmem:[#allocation7 + $0x10] sm:$0xff] %v1261_v42  ;;  %566 = vst [vmem:[#allocation7 + $0xe0] sm:$0xff] %v1263_v43  ;;  %v643_v27 = vmul.f32 %v1261_v42, %v1261_v42  ;;  %v588_v31 = vadd.f32 %v587_v26, %v1261_v42 }
 0x109   :  { %v879_v44 = vpop.f32.mrf.mxu0  ;;  %v931_v45 = vpop.f32.mrf.mxu1 }
 0x10a   :  { %v691_v34 = vadd.f32 %v690_v30, %v643_v27 }
 0x10b   :  { %v1267_v46 = vpop.f32.mrf.mxu0  ;;  %v1269_v47 = vpop.f32.mrf.mxu1 }
 0x10c   :  { %541 = vst [vmem:[#allocation7 + $0x18] sm:$0xff] %v1267_v46  ;;  %567 = vst [vmem:[#allocation7 + $0xe8] sm:$0xff] %v1269_v47  ;;  %v644_v32 = vmul.f32 %v1267_v46, %v1267_v46  ;;  %v589_v37 = vadd.f32 %v588_v31, %v1267_v46 }
 0x10d   :  { %v880_v48 = vpop.f32.mrf.mxu0  ;;  %v932_v49 = vpop.f32.mrf.mxu1 }
 0x10e   :  { %v692_v42 = vadd.f32 %v691_v34, %v644_v32 }
 0x10f   :  { %v1273_v50 = vpop.f32.mrf.mxu0  ;;  %v1275_v51 = vpop.f32.mrf.mxu1 }
 0x110   :  { %542 = vst [vmem:[#allocation7 + $0x20] sm:$0xff] %v1273_v50  ;;  %568 = vst [vmem:[#allocation7 + $0xf0] sm:$0xff] %v1275_v51  ;;  %v645_v38 = vmul.f32 %v1273_v50, %v1273_v50  ;;  %v590_v44 = vadd.f32 %v589_v37, %v1273_v50 }
 0x111   :  { %v883_v52 = vpop.f32.mrf.mxu0  ;;  %v935_v53 = vpop.f32.mrf.mxu1 }
 0x112   :  { %v693_v46 = vadd.f32 %v692_v42, %v645_v38 }
 0x113   :  { %v1279_v54 = vpop.f32.mrf.mxu0  ;;  %v1281_v55 = vpop.f32.mrf.mxu1 }
 0x114   :  { %543 = vst [vmem:[#allocation7 + $0x28] sm:$0xff] %v1279_v54  ;;  %569 = vst [vmem:[#allocation7 + $0xf8] sm:$0xff] %v1281_v55  ;;  %v646_v45 = vmul.f32 %v1279_v54, %v1279_v54  ;;  %v591_v52 = vadd.f32 %v590_v44, %v1279_v54 }
 0x115   :  { %v884_v56 = vpop.f32.mrf.mxu0  ;;  %v936_v57 = vpop.f32.mrf.mxu1 }
 0x116   :  { %v694_v50 = vadd.f32 %v693_v46, %v646_v45 }
 0x117   :  { %v1285_v58 = vpop.f32.mrf.mxu0  ;;  %v1287_v59 = vpop.f32.mrf.mxu1 }
 0x118   :  { %544 = vst [vmem:[#allocation7 + $0x30] sm:$0xff] %v1285_v58  ;;  %570 = vst [vmem:[#allocation7 + $0x100] sm:$0xff] %v1287_v59  ;;  %v647_v53 = vmul.f32 %v1285_v58, %v1285_v58 }
 0x119   :  { %v887_v60 = vpop.f32.mrf.mxu0  ;;  %v939_v61 = vpop.f32.mrf.mxu1 }
 0x11a   :  { %v592_v60 = vadd.f32 %v591_v52, %v1285_v58 }
 0x11b   :  { %v1291_v62 = vpop.f32.mrf.mxu0  ;;  %v1293_v63 = vpop.f32.mrf.mxu1 }
 0x11c   :  { %545 = vst [vmem:[#allocation7 + $0x38] sm:$0xff] %v1291_v62  ;;  %571 = vst [vmem:[#allocation7 + $0x108] sm:$0xff] %v1293_v63  ;;  %v648_v61 = vmul.f32 %v1291_v62, %v1291_v62  ;;  %v593_v54 = vadd.f32 %v592_v60, %v1291_v62 }
 0x11d   :  { %v888_v0 = vpop.f32.mrf.mxu0  ;;  %v940_v1 = vpop.f32.mrf.mxu1 }
 0x11f   :  { %v1297_v2 = vpop.f32.mrf.mxu0  ;;  %v1299_v3 = vpop.f32.mrf.mxu1 }
 0x120   :  { %546 = vst [vmem:[#allocation7 + $0x40] sm:$0xff] %v1297_v2  ;;  %572 = vst [vmem:[#allocation7 + $0x110] sm:$0xff] %v1299_v3  ;;  %v594_v58 = vadd.f32 %v593_v54, %v1297_v2 }
 0x121   :  { %v891_v4 = vpop.f32.mrf.mxu0  ;;  %v943_v5 = vpop.f32.mrf.mxu1 }
 0x122   :  { %v695_v4 = vadd.f32 %v694_v50, %v647_v53  ;;  %v649_v5 = vmul.f32 %v1297_v2, %v1297_v2 }
 0x123   :  { %v1303_v6 = vpop.f32.mrf.mxu0  ;;  %v1305_v7 = vpop.f32.mrf.mxu1 }
 0x124   :  { %547 = vst [vmem:[#allocation7 + $0x48] sm:$0xff] %v1303_v6  ;;  %573 = vst [vmem:[#allocation7 + $0x118] sm:$0xff] %v1305_v7  ;;  %v595_v62 = vadd.f32 %v594_v58, %v1303_v6 }
 0x125   :  { %v892_v8 = vpop.f32.mrf.mxu0  ;;  %v944_v9 = vpop.f32.mrf.mxu1 }
 0x127   :  { %v1309_v10 = vpop.f32.mrf.mxu0  ;;  %v1311_v11 = vpop.f32.mrf.mxu1 }
 0x128   :  { %548 = vst [vmem:[#allocation7 + $0x50] sm:$0xff] %v1309_v10  ;;  %574 = vst [vmem:[#allocation7 + $0x120] sm:$0xff] %v1311_v11  ;;  %v596_v2 = vadd.f32 %v595_v62, %v1309_v10 }
 0x129   :  { %v895_v12 = vpop.f32.mrf.mxu0  ;;  %v947_v13 = vpop.f32.mrf.mxu1 }
 0x12a   :  { %v696_v12 = vadd.f32 %v695_v4, %v648_v61  ;;  %v650_v13 = vmul.f32 %v1303_v6, %v1303_v6 }
 0x12b   :  { %v1315_v14 = vpop.f32.mrf.mxu0  ;;  %v1317_v15 = vpop.f32.mrf.mxu1 }
 0x12c   :  { %549 = vst [vmem:[#allocation7 + $0x58] sm:$0xff] %v1315_v14  ;;  %575 = vst [vmem:[#allocation7 + $0x128] sm:$0xff] %v1317_v15  ;;  %v652_v27 = vmul.f32 %v1315_v14, %v1315_v14  ;;  %v597_v6 = vadd.f32 %v596_v2, %v1315_v14 }
 0x12d   :  { %v896_v16 = vpop.f32.mrf.mxu0  ;;  %v948_v17 = vpop.f32.mrf.mxu1 }
 0x12f   :  { %v1321_v18 = vpop.f32.mrf.mxu0  ;;  %v1323_v19 = vpop.f32.mrf.mxu1 }
 0x130   :  { %550 = vst [vmem:[#allocation7 + $0x60] sm:$0xff] %v1321_v18  ;;  %576 = vst [vmem:[#allocation7 + $0x130] sm:$0xff] %v1323_v19  ;;  %v653_v31 = vmul.f32 %v1321_v18, %v1321_v18 }
 0x131   :  { %v899_v20 = vpop.f32.mrf.mxu0  ;;  %v951_v21 = vpop.f32.mrf.mxu1 }
 0x132   :  { %v697_v20 = vadd.f32 %v696_v12, %v649_v5  ;;  %v651_v21 = vmul.f32 %v1309_v10, %v1309_v10  ;;  %v598_v10 = vadd.f32 %v597_v6, %v1321_v18 }
 0x133   :  { %v1329_v23 = vpop.f32.mrf.mxu0  ;;  %v1331_v24 = vpop.f32.mrf.mxu1 }
 0x134   :  { %551 = vst [vmem:[#allocation7 + $0x68] sm:$0xff] %v1329_v23  ;;  %577 = vst [vmem:[#allocation7 + $0x138] sm:$0xff] %v1331_v24  ;;  %v698_v26 = vadd.f32 %v697_v20, %v650_v13  ;;  %v654_v38 = vmul.f32 %v1329_v23, %v1329_v23  ;;  %v599_v14 = vadd.f32 %v598_v10, %v1329_v23 }
 0x135   :  { %v900_v28 = vpop.f32.mrf.mxu0  ;;  %v952_v29 = vpop.f32.mrf.mxu1 }
 0x136   :  { %v699_v30 = vadd.f32 %v698_v26, %v651_v21 }
 0x137   :  { %v1344_v33 = vpop.f32.mrf.mxu0  ;;  %v1346_v36 = vpop.f32.mrf.mxu1 }
 0x138   :  { %552 = vst [vmem:[#allocation7 + $0x70] sm:$0xff] %v1344_v33  ;;  %578 = vst [vmem:[#allocation7 + $0x140] sm:$0xff] %v1346_v36  ;;  %v700_v37 = vadd.f32 %v699_v30, %v652_v27  ;;  %v655_v44 = vmul.f32 %v1344_v33, %v1344_v33  ;;  %v600_v18 = vadd.f32 %v599_v14, %v1344_v33 }
 0x139   :  { %v903_v40 = vpop.f32.mrf.mxu0  ;;  %v955_v41 = vpop.f32.mrf.mxu1 }
 0x13a   :  { %v701_v42 = vadd.f32 %v700_v37, %v653_v31 }
 0x13b   :  { %v1356_v48 = vpop.f32.mrf.mxu0  ;;  %v1358_v49 = vpop.f32.mrf.mxu1 }
 0x13c   :  { %553 = vst [vmem:[#allocation7 + $0x78] sm:$0xff] %v1356_v48  ;;  %579 = vst [vmem:[#allocation7 + $0x148] sm:$0xff] %v1358_v49  ;;  %v702_v52 = vadd.f32 %v701_v42, %v654_v38  ;;  %v656_v53 = vmul.f32 %v1356_v48, %v1356_v48  ;;  %v601_v23 = vadd.f32 %v600_v18, %v1356_v48 }
 0x13d   :  { %v904_v56 = vpop.f32.mrf.mxu0  ;;  %v956_v57 = vpop.f32.mrf.mxu1 }
 0x13e   :  { %v703_v50 = vadd.f32 %v702_v52, %v655_v44 }
 0x13f   :  { %v404_v0 = vpop.f32.mrf.mxu0  ;;  %v1368_v1 = vpop.f32.mrf.mxu1 }
 0x140   :  { %554 = vst [vmem:[#allocation7 + $0x80] sm:$0xff] %v404_v0  ;;  %580 = vst [vmem:[#allocation7 + $0x150] sm:$0xff] %v1368_v1  ;;  %v657_v60 = vmul.f32 %v404_v0, %v404_v0  ;;  %v704_v54 = vadd.f32 %v703_v50, %v656_v53  ;;  %v602_v5 = vadd.f32 %v601_v23, %v404_v0 }
 0x141   :  { %v907_v8 = vpop.f32.mrf.mxu0  ;;  %v959_v9 = vpop.f32.mrf.mxu1 }
 0x142   :  { %v705_v12 = vadd.f32 %v704_v54, %v657_v60 }
 0x143   :  { %v407_v16 = vpop.f32.mrf.mxu0  ;;  %v1377_v17 = vpop.f32.mrf.mxu1 }
 0x144   :  { %555 = vst [vmem:[#allocation7 + $0x88] sm:$0xff] %v407_v16  ;;  %581 = vst [vmem:[#allocation7 + $0x158] sm:$0xff] %v1377_v17  ;;  %v658_v8 = vmul.f32 %v407_v16, %v407_v16  ;;  %v603_v58 = vadd.f32 %v602_v5, %v407_v16 }
 0x145   :  { %v908_v22 = vpop.f32.mrf.mxu0  ;;  %v960_v25 = vpop.f32.mrf.mxu1 }
 0x146   :  { %v706_v62 = vadd.f32 %v705_v12, %v658_v8 }
 0x147   :  { %v412_v28 = vpop.f32.mrf.mxu0  ;;  %v1386_v29 = vpop.f32.mrf.mxu1 }
 0x148   :  { %556 = vst [vmem:[#allocation7 + $0x90] sm:$0xff] %v412_v28  ;;  %582 = vst [vmem:[#allocation7 + $0x160] sm:$0xff] %v1386_v29  ;;  %v659_v13 = vmul.f32 %v412_v28, %v412_v28  ;;  %v604_v21 = vadd.f32 %v603_v58, %v412_v28 }
 0x149   :  { %v911_v32 = vpop.f32.mrf.mxu0  ;;  %v963_v34 = vpop.f32.mrf.mxu1 }
 0x14a   :  { %v707_v2 = vadd.f32 %v706_v62, %v659_v13 }
 0x14b   :  { %v415_v40 = vpop.f32.mrf.mxu0  ;;  %v1395_v41 = vpop.f32.mrf.mxu1 }
 0x14c   :  { %557 = vst [vmem:[#allocation7 + $0x98] sm:$0xff] %v415_v40  ;;  %583 = vst [vmem:[#allocation7 + $0x168] sm:$0xff] %v1395_v41  ;;  %v660_v22 = vmul.f32 %v415_v40, %v415_v40  ;;  %v605_v0 = vadd.f32 %v604_v21, %v415_v40 }
 0x14d   :  { %v912_v45 = vpop.f32.mrf.mxu0  ;;  %v964_v46 = vpop.f32.mrf.mxu1 }
 0x14e   :  { %v708_v6 = vadd.f32 %v707_v2, %v660_v22 }
 0x14f   :  { %v420_v56 = vpop.f32.mrf.mxu0  ;;  %v1404_v57 = vpop.f32.mrf.mxu1 }
 0x150   :  { %558 = vst [vmem:[#allocation7 + $0xa0] sm:$0xff] %v420_v56  ;;  %584 = vst [vmem:[#allocation7 + $0x170] sm:$0xff] %v1404_v57  ;;  %v661_v27 = vmul.f32 %v420_v56, %v420_v56  ;;  %v606_v31 = vadd.f32 %v605_v0, %v420_v56 }
 0x151   :  { %v915_v61 = vpop.f32.mrf.mxu0  ;;  %v967_v4 = vpop.f32.mrf.mxu1 }
 0x152   :  { %v709_v10 = vadd.f32 %v708_v6, %v661_v27 }
 0x153   :  { %v423_v9 = vpop.f32.mrf.mxu0  ;;  %v1408_v33 = vpop.f32.mrf.mxu1 }
 0x154   :  { %559 = vst [vmem:[#allocation7 + $0xa8] sm:$0xff] %v423_v9  ;;  %585 = vst [vmem:[#allocation7 + $0x178] sm:$0xff] %v1408_v33  ;;  %v662_v32 = vmul.f32 %v423_v9, %v423_v9  ;;  %v607_v38 = vadd.f32 %v606_v31, %v423_v9 }
 0x155   :  { %v916_v20 = vpop.f32.mrf.mxu0  ;;  %v968_v48 = vpop.f32.mrf.mxu1 }
 0x156   :  { %v710_v44 = vadd.f32 %v709_v10, %v662_v32 }
 0x157   :  { %v428_v25 = vpop.f32.mrf.mxu0  ;;  %v1411_v26 = vpop.f32.mrf.mxu1 }
 0x158   :  { %560 = vst [vmem:[#allocation7 + $0xb0] sm:$0xff] %v428_v25  ;;  %586 = vst [vmem:[#allocation7 + $0x180] sm:$0xff] %v1411_v26  ;;  %v663_v28 = vmul.f32 %v428_v25, %v428_v25  ;;  %v608_v45 = vadd.f32 %v607_v38, %v428_v25 }
 0x159   :  { %v919_v30 = vpop.f32.mrf.mxu0  ;;  %v971_v16 = vpop.f32.mrf.mxu1 }
 0x15a   :  { %v711_v52 = vadd.f32 %v710_v44, %v663_v28 }
 0x15b   :  { %v431_v34 = vpop.f32.mrf.mxu0  ;;  %v535_v37 = vpop.f32.mrf.mxu1 }
 0x15c   :  { %561 = vst [vmem:[#allocation7 + $0xb8] sm:$0xff] %v431_v34  ;;  %v664_v40 = vmul.f32 %v431_v34, %v431_v34  ;;  %v609_v18 = vadd.f32 %v608_v45, %v431_v34 }
 0x15d   :  { %v920_v42 = vpop.f32.mrf.mxu0  ;;  %v972_v14 = vpop.f32.mrf.mxu1 }
 0x15e   :  { %v712_v50 = vadd.f32 %v711_v52, %v664_v40 }
 0x15f   :  { %v436_v46 = vpop.f32.mrf.mxu0 }
 0x160   :  { %562 = vst [vmem:[#allocation7 + $0xc0] sm:$0xff] %v436_v46  ;;  %v665_v53 = vmul.f32 %v436_v46, %v436_v46  ;;  %v610_v23 = vadd.f32 %v609_v18, %v436_v46 }
 0x161   :  { %v923_v56 = vpop.f32.mrf.mxu0 }
 0x162   :  { %v713_v61 = vadd.f32 %v712_v50, %v665_v53 }
 0x163   :  { %v439_v60 = vpop.f32.mrf.mxu0 }
 0x164   :  { %563 = vst [vmem:[#allocation7 + $0xc8] sm:$0xff] %v439_v60  ;;  %v611_v4 = vadd.f32 %v610_v23, %v439_v60  ;;  %v666_v54 = vmul.f32 %v439_v60, %v439_v60 }
 0x165   :  { %v924_v5 = vpop.f32.mrf.mxu0 }
 0x166   :  { %1084 = shalt.err (!%p1081_p0)
}
 0x167   :  { %s1148_s28 = smov 128   ;;  %s1149_s29 = smov 8   ;;  %v667_v8 = vmul.f32 %v1251_v35, %v1251_v35  ;;  %v612_v9 = vadd.f32 %v611_v4, %v1251_v35  ;;  %v714_v12 = vadd.f32 %v713_v61, %v666_v54  ;;  %v668_v58 = vmul.f32 %v1257_v39, %v1257_v39 }
 0x168   :  { %757 = dma.vmem_to_hbm [thread:$0]  %s752_s1, 6272, %s1494_s2, [#allocation4], %s1148_s28, %s1148_s28, %s1149_s29   ;;  %v669_v48 = vmul.f32 %v1263_v43, %v1263_v43  ;;  %v670_v22 = vmul.f32 %v1269_v47, %v1269_v47  ;;  %v671_v35 = vmul.f32 %v1275_v51, %v1275_v51  ;;  %v679_v40 = vmul.f32 %v1323_v19, %v1323_v19 }
 0x169   :  { %v613_v13 = vadd.f32 %v612_v9, %v1257_v39  ;;  %v715_v20 = vadd.f32 %v714_v12, %v667_v8  ;;  %v672_v39 = vmul.f32 %v1281_v55, %v1281_v55  ;;  %v680_v18 = vmul.f32 %v1331_v24, %v1331_v24  ;;  %s1150_s2 = smov [#allocation8]   ;;  %s1151_s7 = smov [#allocation10]  }
 0x16a   :  { %v681_v56 = vmul.f32 %v1346_v36, %v1346_v36  ;;  %v682_v23 = vmul.f32 %v1358_v49, %v1358_v49  ;;  %v683_v61 = vmul.f32 %v1368_v1, %v1368_v1  ;;  %v684_v54 = vmul.f32 %v1377_v17, %v1377_v17  ;;  %s764_s6 = sshll.u32 %s1150_s2, 4  ;;  %s774_s8 = sshll.u32 %s1151_s7, 4  ;;  %s765_s6 = int_to_ptr.vmem [resolvable:$true] %s764_s6  ;;  %s775_s8 = int_to_ptr.vmem [resolvable:$true] %s774_s8 }
 0x16b   :  { %v614_v62 = vadd.f32 %v613_v13, %v1263_v43  ;;  %v716_v21 = vadd.f32 %v715_v20, %v668_v58  ;;  %v673_v43 = vmul.f32 %v1287_v59, %v1287_v59  ;;  %v685_v8 = vmul.f32 %v1386_v29, %v1386_v29  ;;  %s1093_s9 = scalar_lea.vmem %s765_s6, 128  ;;  %p1098_p2 = scmp.lt.s32.totalorder %s765_s6, %s765_s6 }
 0x16c   :  { %v686_v12 = vmul.f32 %v1395_v41, %v1395_v41  ;;  %v687_v13 = vmul.f32 %v1404_v57, %v1404_v57  ;;  %p1094_p1 = scmp.ne.s32.totalorder %s765_s6, %s1093_s9  ;;  %p1099_p3 = scmp.lt.s32.totalorder %s1093_s9, %s1093_s9 }
 0x16d   :  { %v615_v25 = vadd.f32 %v614_v62, %v1269_v47  ;;  %v717_v2 = vadd.f32 %v716_v21, %v669_v48  ;;  %v674_v47 = vmul.f32 %v1293_v63, %v1293_v63  ;;  %v688_v48 = vmul.f32 %v1408_v33, %v1408_v33 }
 0x16e   :  { %p1100_p4 = por %p1099_p3, %p1098_p2 }
 0x16f   :  { %v616_v0 = vadd.f32 %v615_v25, %v1275_v51  ;;  %v718_v27 = vadd.f32 %v717_v2, %v670_v22  ;;  %v675_v51 = vmul.f32 %v1299_v3, %v1299_v3 }
 0x170   :  { %p1101_p5 = pnand %p1100_p4, %p1094_p1 }
 0x171   :  { %v617_v30 = vadd.f32 %v616_v0, %v1281_v55  ;;  %v719_v16 = vadd.f32 %v718_v27, %v671_v35  ;;  %v676_v55 = vmul.f32 %v1305_v7, %v1305_v7 }
 0x173   :  { %v720_v6 = vadd.f32 %v719_v16, %v672_v39  ;;  %v618_v31 = vadd.f32 %v617_v30, %v1287_v59  ;;  %v677_v59 = vmul.f32 %v1311_v11, %v1311_v11 }
 0x175   :  { %v619_v32 = vadd.f32 %v618_v31, %v1293_v63  ;;  %v721_v34 = vadd.f32 %v720_v6, %v673_v43  ;;  %v678_v63 = vmul.f32 %v1317_v15, %v1317_v15 }
 0x177   :  { %v620_v37 = vadd.f32 %v619_v32, %v1299_v3  ;;  %v722_v10 = vadd.f32 %v721_v34, %v674_v47 }
 0x179   :  { %v621_v38 = vadd.f32 %v620_v37, %v1305_v7  ;;  %v723_v28 = vadd.f32 %v722_v10, %v675_v51 }
 0x17b   :  { %v622_v42 = vadd.f32 %v621_v38, %v1311_v11  ;;  %v724_v14 = vadd.f32 %v723_v28, %v676_v55 }
 0x17d   :  { %v623_v44 = vadd.f32 %v622_v42, %v1317_v15  ;;  %v725_v45 = vadd.f32 %v724_v14, %v677_v59 }
 0x17f   :  { %v624_v3 = vadd.f32 %v623_v44, %v1323_v19  ;;  %v726_v46 = vadd.f32 %v725_v45, %v678_v63 }
 0x181   :  { %v727_v7 = vadd.f32 %v726_v46, %v679_v40  ;;  %v625_v52 = vadd.f32 %v624_v3, %v1331_v24 }
 0x183   :  { %v728_v11 = vadd.f32 %v727_v7, %v680_v18  ;;  %v626_v53 = vadd.f32 %v625_v52, %v1346_v36 }
 0x185   :  { %v729_v15 = vadd.f32 %v728_v11, %v681_v56  ;;  %v627_v50 = vadd.f32 %v626_v53, %v1358_v49 }
 0x187   :  { %v730_v19 = vadd.f32 %v729_v15, %v682_v23  ;;  %v628_v60 = vadd.f32 %v627_v50, %v1368_v1 }
 0x189   :  { %v731_v4 = vadd.f32 %v730_v19, %v683_v61  ;;  %v629_v24 = vadd.f32 %v628_v60, %v1377_v17 }
 0x18b   :  { %v732_v5 = vadd.f32 %v731_v4, %v684_v54  ;;  %v630_v36 = vadd.f32 %v629_v24, %v1386_v29  ;;  %v689_v29 = vmul.f32 %v1411_v26, %v1411_v26 }
 0x18d   :  { %v733_v9 = vadd.f32 %v732_v5, %v685_v8  ;;  %v631_v49 = vadd.f32 %v630_v36, %v1395_v41 }
 0x18f   :  { %v734_v58 = vadd.f32 %v733_v9, %v686_v12  ;;  %v632_v1 = vadd.f32 %v631_v49, %v1404_v57 }
 0x191   :  { %v735_v20 = vadd.f32 %v734_v58, %v687_v13  ;;  %v633_v17 = vadd.f32 %v632_v1, %v1408_v33 }
 0x193   :  { %v736_v62 = vadd.f32 %v735_v20, %v688_v48  ;;  %v634_v21 = vadd.f32 %v633_v17, %v1411_v26 }
 0x195   :  { %v635_v22 = vrot.slane %v634_v21, 4  ;;  %v737_v41 = vadd.f32 %v736_v62, %v689_v29 }
 0x197   :  { %v636_v25 = vadd.f32 %v635_v22, %v634_v21  ;;  %v738_v2 = vrot.slane %v737_v41, 4 }
 0x199   :  { %v637_v35 = vrot.slane %v636_v25, 2  ;;  %v739_v0 = vadd.f32 %v738_v2, %v737_v41 }
 0x19b   :  { %v638_v27 = vadd.f32 %v637_v35, %v636_v25  ;;  %v740_v57 = vrot.slane %v739_v0, 2 }
 0x19d   :  { %v639_v39 = vrot.slane %v638_v27, 1  ;;  %v741_v30 = vadd.f32 %v740_v57, %v739_v0 }
 0x19f   :  { %v640_v33 = vadd.f32 %v639_v39, %v638_v27  ;;  %v742_v16 = vrot.slane %v741_v30, 1 }
 0x1a1   :  { %744 = vst [vmem:[#allocation8] sm:$0xff] %v640_v33  ;;  %v743_v43 = vadd.f32 %v742_v16, %v741_v30 }
 0x1a2   :  { %1104 = shalt.err (!%p1101_p5)
}
 0x1a3   :  { %767 = dma.vmem_to_hbm [thread:$0]  %s765_s6, 128, %s1495_s3, [#allocation9]   ;;  %745 = vst [vmem:[#allocation10] sm:$0xff] %v743_v43 }
 0x1a4   :  { %s1113_s12 = scalar_lea.vmem %s775_s8, 128  ;;  %p1118_p7 = scmp.lt.s32.totalorder %s775_s8, %s775_s8 }
 0x1a5   :  { %p1114_p6 = scmp.ne.s32.totalorder %s775_s8, %s1113_s12  ;;  %p1119_p8 = scmp.lt.s32.totalorder %s1113_s12, %s1113_s12 }
 0x1a7   :  { %p1120_p9 = por %p1119_p8, %p1118_p7 }
 0x1a9   :  { %p1121_p10 = pnand %p1120_p9, %p1114_p6 }
 0x1ab   :  { %1124 = shalt.err (!%p1121_p10)
}
 0x1ac   :  { %777 = dma.vmem_to_hbm [thread:$0]  %s775_s8, 128, %s1496_s4, [#allocation9]  }
 0x1ad   :  { %1137 = dma.done.wait [#allocation4], 6272  }
 0x1ae   :  { %1138 = vsyncadd [#allocation4], 4294961024 }
 0x1af   :  { %1139 = dma.done.wait [#allocation9], 256  }
 0x1b0   :  { %1140 = vsyncadd [#allocation9], 4294967040 }
 0x1b1   :  { %787 = vsyncpa [#allocation3], 1 }
 0x1b2   :  { %788 = vsyncpa [#allocation6], 1 }
 0x1b3   :  { %789 = vsyncpa [#allocation4], 1 }
 0x1b4   :  { %790 = vsyncpa [#allocation9], 1 }

</bundles_post_ra>
